<compile_context>
chip_gen: v7x
topology: tpu7x:2x2x1
jax: 0.10.0
libtpu: 0.0.40
codegen_flags: <defaults>
</compile_context>

<pallas_src>
import functools

import jax
import jax.numpy as jnp
from jax import lax
from jax.experimental import pallas as pl
from jax.experimental.pallas import tpu as pltpu

LANES = 128
NUM_CORES = 2  # leading "parallel" grid axis (v7x dual-TC; no-op on v5e/v6e)


def _row_align(*dtypes) -> int:
    # Sublane packing: f32 -> 8 rows per vreg, bf16 -> 16, int8/fp8 -> 32.
    itemsize = min(int(jnp.dtype(d).itemsize) for d in dtypes)
    return 8 * max(1, 4 // itemsize)


def _mse_kernel(x_ref, y_ref, o_ref, *, tile_rows: int, rows_valid: int,
                num_full_tiles: int, steps_per_core: int, masked: bool):
    c = pl.program_id(0)           # core / partial-sum index
    i = pl.program_id(1)           # row-tile step within this core

    @pl.when(i == 0)
    def _():
        o_ref[...] = jnp.zeros_like(o_ref)

    # Upcast per-tile (bf16 inputs stream half the HBM bytes).
    d = x_ref[...].astype(jnp.float32) - y_ref[...].astype(jnp.float32)
    dd = d * d                                         # (tile_rows, 128) f32

    def accumulate(vals):
        # Layout-preserving reshape; sum over leading axis = vreg-wise VPU adds.
        part = vals.reshape(tile_rows // 8, 8, LANES).sum(axis=0)   # (8, 128)
        o_ref[...] += part[None, :, :]

    if not masked:
        accumulate(dd)
    else:
        t = c * steps_per_core + i          # logical (global) tile index

        @pl.when(t < num_full_tiles)        # steady state: no mask cost
        def _():
            accumulate(dd)

        @pl.when(t >= num_full_tiles)       # boundary / redundant tiles only
        def _():
            row = t * tile_rows + lax.broadcasted_iota(jnp.int32, dd.shape, 0)
            accumulate(jnp.where(row < rows_valid, dd, 0.0))


def mse_loss_pallas(x: jax.Array, y: jax.Array, *,
                    block_bytes: int = 2 * 1024 * 1024) -> jax.Array:
    assert x.shape == y.shape, "input/target shape mismatch"
    n = int(x.size)
    if n == 0:
        # nn.MSELoss on empty input yields NaN; avoid a 0-division in-kernel.
        return jnp.float32(jnp.nan)

    xf = x.reshape(-1)
    yf = y.reshape(-1)

    align = _row_align(x.dtype, y.dtype)
    rows = n // LANES

    if rows < align:
        # Tiny input (< ~2K elements): not worth a kernel launch.
        d = xf.astype(jnp.float32) - yf.astype(jnp.float32)
        return (jnp.sum(d * d) / jnp.float32(n)).astype(jnp.float32)

    # Pad-free ragged handling: bulk through the kernel, tail via a tiny sum.
    tail = n - rows * LANES
    tail_sum = jnp.float32(0.0)
    if tail:
        # TODO(synk): numel % 128 != 0 — XLA materializes the leading slice
        # (one extra pass over the inputs); still cheaper than the old
        # full-array jnp.pad (no padded-region write, no element-level mask).
        dt = xf[rows * LANES:].astype(jnp.float32) - yf[rows * LANES:].astype(jnp.float32)
        tail_sum = jnp.sum(dt * dt)
        xf = xf[: rows * LANES]
        yf = yf[: rows * LANES]

    # Zero-copy (bitcast) reshape to a lane-dense 2-D slab.
    x2d = xf.reshape(rows, LANES)
    y2d = yf.reshape(rows, LANES)

    # Tile sizing: ~block_bytes per input per step, dtype-scaled so bf16 moves
    # the same bytes/step; aligned to sublane packing; never exceeds `rows`.
    itemsize = max(int(jnp.dtype(x.dtype).itemsize), int(jnp.dtype(y.dtype).itemsize))
    tile_rows = max(align, (block_bytes // (LANES * itemsize)) // align * align)
    tile_rows = min(tile_rows, (rows // align) * align)
    assert tile_rows % 8 == 0 and tile_rows % align == 0 and tile_rows <= rows

    num_tiles = -(-rows // tile_rows)                 # cdiv
    steps_per_core = -(-num_tiles // NUM_CORES)       # cdiv
    num_full_tiles = rows // tile_rows
    # Masking needed iff the last real tile is partial OR the 2-core split
    # creates redundant (fully out-of-range) logical tiles.
    masked = (rows % tile_rows != 0) or (NUM_CORES * steps_per_core != num_tiles)

    kernel = functools.partial(
        _mse_kernel,
        tile_rows=tile_rows,
        rows_valid=rows,
        num_full_tiles=num_full_tiles,
        steps_per_core=steps_per_core,
        masked=masked,
    )

    # Clamp the DMA block index so redundant logical tiles re-read a valid
    # block (their contribution is masked to zero inside the kernel).
    def in_map(c, i):
        return (jnp.minimum(c * steps_per_core + i, num_tiles - 1), 0)

    partials = pl.pallas_call(
        kernel,
        out_shape=jax.ShapeDtypeStruct((NUM_CORES, 8, LANES), jnp.float32),
        grid_spec=pltpu.PrefetchScalarGridSpec(
            num_scalar_prefetch=0,
            grid=(NUM_CORES, steps_per_core),
            in_specs=[
                pl.BlockSpec((tile_rows, LANES), in_map),
                pl.BlockSpec((tile_rows, LANES), in_map),
            ],
            # Per-core (8,128) partial sum, resident across the reduction axis.
            out_specs=pl.BlockSpec((1, 8, LANES), lambda c, i: (c, 0, 0)),
        ),
        compiler_params=pltpu.CompilerParams(
            dimension_semantics=("parallel", "arbitrary"),
            vmem_limit_bytes=32 * 1024 * 1024,
        ),
        cost_estimate=pl.CostEstimate(
            flops=3 * n,
            transcendentals=0,
            bytes_accessed=n * (itemsize + itemsize) + NUM_CORES * 8 * LANES * 4,
        ),
    )(x2d, y2d)

    total = jnp.sum(partials, dtype=jnp.float32) + tail_sum
    return (total / jnp.float32(n)).astype(jnp.float32)


if __name__ == "__main__":
    key = jax.random.PRNGKey(0)

    def run_check(idx, shape, dtype=jnp.float32, **kw):
        k1, k2 = jax.random.split(jax.random.fold_in(key, idx))
        x = jax.random.normal(k1, shape, dtype=jnp.float32).astype(dtype)
        y = jax.random.normal(k2, shape, dtype=jnp.float32).astype(dtype)
        loss = jax.block_until_ready(mse_loss_pallas(x, y, **kw))
        ref = jnp.mean((x.astype(jnp.float32) - y.astype(jnp.float32)) ** 2)
        assert jnp.allclose(loss, ref, rtol=1e-5, atol=1e-6), (shape, dtype, loss, ref)

    # Small NCHW shape typical of an HDR image loss (zero-copy, single tile).
    run_check(0, (2, 4, 16, 16))
    # Native bf16 inputs (halved HBM traffic path, 16-row sublane alignment).
    run_check(1, (2, 4, 16, 16), dtype=jnp.bfloat16)
    # Ragged last row-tile: exercises the pl.when-gated in-kernel masking.
    run_check(2, (2, 4, 16, 17))
    # numel % 128 != 0: exercises the pad-free bulk + tail path.
    run_check(3, (3, 5, 70))
    # Multi-step per-core reduction (small block_bytes forces 2 tiles/core).
    run_check(4, (2, 4, 64, 64), block_bytes=32 * 1024)
    # Tiny input: pure-jnp fallback path.
    run_check(5, (3, 5))

    print("KERNEL_OK")
</pallas_src>

<mosaic_0001>
module attributes {stable_mosaic.version = 11 : i64} {
  func.func @_mse_kernel(%arg0: i32, %arg1: i32, %arg2: memref<16x128xf32, #tpu.memory_space<vmem>>, %arg3: memref<16x128xf32, #tpu.memory_space<vmem>>, %arg4: memref<1x8x128xf32, #tpu.memory_space<vmem>>) attributes {dimension_semantics = [#tpu.dimension_semantics<parallel>, #tpu.dimension_semantics<arbitrary>], iteration_bounds = array<i64: 2, 1>, scalar_prefetch = 0 : i64, scratch_operands = 0 : i64, tpu.core_type = #tpu.core_type<tc>, window_params = [{transform_indices = @transform_0, window_bounds = array<i64: 16, 128>}, {transform_indices = @transform_1, window_bounds = array<i64: 16, 128>}, {transform_indices = @transform_2, window_bounds = array<i64: 1, 8, 128>}]} {
    %c0_i32 = arith.constant 0 : i32
    %0 = arith.cmpi eq, %arg1, %c0_i32 : i32
    %1 = arith.extui %0 : i1 to i32
    %c0_i32_0 = arith.constant 0 : i32
    %2 = arith.cmpi ne, %1, %c0_i32_0 : i32
    scf.if %2 {
      %cst = arith.constant 0.000000e+00 : f32
      %15 = vector.broadcast %cst : f32 to vector<1x8x128xf32>
      %c0_8 = arith.constant 0 : index
      %c0_9 = arith.constant 0 : index
      %c0_10 = arith.constant 0 : index
      %16 = vector.load %arg4[%c0_8, %c0_9, %c0_10] : memref<1x8x128xf32, #tpu.memory_space<vmem>>, vector<1x8x128xf32>
      tpu.vector_store %arg4[%c0_8, %c0_9, %c0_10], %15 {strides = array<i32>} : memref<1x8x128xf32, #tpu.memory_space<vmem>>, vector<1x8x128xf32>,
    } else {
    }
    %c0 = arith.constant 0 : index
    %c0_1 = arith.constant 0 : index
    %3 = vector.load %arg2[%c0, %c0_1] : memref<16x128xf32, #tpu.memory_space<vmem>>, vector<16x128xf32>
    %c0_2 = arith.constant 0 : index
    %c0_3 = arith.constant 0 : index
    %4 = vector.load %arg3[%c0_2, %c0_3] : memref<16x128xf32, #tpu.memory_space<vmem>>, vector<16x128xf32>
    %5 = arith.subf %3, %4 : vector<16x128xf32>
    %6 = arith.mulf %5, %5 : vector<16x128xf32>
    %c1_i32 = arith.constant 1 : i32
    %7 = arith.muli %arg0, %c1_i32 : i32
    %8 = arith.addi %7, %arg1 : i32
    %c1_i32_4 = arith.constant 1 : i32
    %9 = arith.cmpi slt, %8, %c1_i32_4 : i32
    %10 = arith.extui %9 : i1 to i32
    %c0_i32_5 = arith.constant 0 : i32
    %11 = arith.cmpi ne, %10, %c0_i32_5 : i32
    scf.if %11 {
      %15 = vector.shape_cast %6 : vector<16x128xf32> to vector<2x8x128xf32>
      %cst = arith.constant dense<0.000000e+00> : vector<8x128xf32>
      %16 = vector.multi_reduction <add>, %15, %cst [0] : vector<2x8x128xf32> to vector<8x128xf32>
      %c0_8 = arith.constant 0 : index
      %c0_9 = arith.constant 0 : index
      %c0_10 = arith.constant 0 : index
      %17 = vector.load %arg4[%c0_8, %c0_9, %c0_10] : memref<1x8x128xf32, #tpu.memory_space<vmem>>, vector<1x8x128xf32>
      %18 = vector.shape_cast %16 : vector<8x128xf32> to vector<1x8x128xf32>
      %19 = arith.addf %17, %18 : vector<1x8x128xf32>
      %c0_11 = arith.constant 0 : index
      %c0_12 = arith.constant 0 : index
      %c0_13 = arith.constant 0 : index
      %20 = vector.load %arg4[%c0_11, %c0_12, %c0_13] : memref<1x8x128xf32, #tpu.memory_space<vmem>>, vector<1x8x128xf32>
      tpu.vector_store %arg4[%c0_11, %c0_12, %c0_13], %19 {strides = array<i32>} : memref<1x8x128xf32, #tpu.memory_space<vmem>>, vector<1x8x128xf32>,
    } else {
    }
    %c1_i32_6 = arith.constant 1 : i32
    %12 = arith.cmpi sge, %8, %c1_i32_6 : i32
    %13 = arith.extui %12 : i1 to i32
    %c0_i32_7 = arith.constant 0 : i32
    %14 = arith.cmpi ne, %13, %c0_i32_7 : i32
    scf.if %14 {
      %c16_i32 = arith.constant 16 : i32
      %15 = arith.muli %8, %c16_i32 : i32
      %16 = tpu.iota {dimensions = array<i32: 0>} : vector<16x128xi32>
      %17 = vector.broadcast %15 : i32 to vector<16x128xi32>
      %18 = arith.addi %17, %16 : vector<16x128xi32>
      %c16_i32_8 = arith.constant 16 : i32
      %19 = vector.broadcast %c16_i32_8 : i32 to vector<16x128xi32>
      %20 = arith.cmpi slt, %18, %19 : vector<16x128xi32>
      %cst = arith.constant 0.000000e+00 : f32
      %21 = vector.broadcast %cst : f32 to vector<16x128xf32>
      %22 = arith.select %20, %6, %21 : vector<16x128xi1>, vector<16x128xf32>
      %23 = vector.shape_cast %22 : vector<16x128xf32> to vector<2x8x128xf32>
      %cst_9 = arith.constant dense<0.000000e+00> : vector<8x128xf32>
      %24 = vector.multi_reduction <add>, %23, %cst_9 [0] : vector<2x8x128xf32> to vector<8x128xf32>
      %c0_10 = arith.constant 0 : index
      %c0_11 = arith.constant 0 : index
      %c0_12 = arith.constant 0 : index
      %25 = vector.load %arg4[%c0_10, %c0_11, %c0_12] : memref<1x8x128xf32, #tpu.memory_space<vmem>>, vector<1x8x128xf32>
      %26 = vector.shape_cast %24 : vector<8x128xf32> to vector<1x8x128xf32>
      %27 = arith.addf %25, %26 : vector<1x8x128xf32>
      %c0_13 = arith.constant 0 : index
      %c0_14 = arith.constant 0 : index
      %c0_15 = arith.constant 0 : index
      %28 = vector.load %arg4[%c0_13, %c0_14, %c0_15] : memref<1x8x128xf32, #tpu.memory_space<vmem>>, vector<1x8x128xf32>
      tpu.vector_store %arg4[%c0_13, %c0_14, %c0_15], %27 {strides = array<i32>} : memref<1x8x128xf32, #tpu.memory_space<vmem>>, vector<1x8x128xf32>,
    } else {
    }
    return
  }
  func.func @transform_0(%arg0: i32, %arg1: i32) -> (i32, i32) {
    %c1_i32 = arith.constant 1 : i32
    %0 = arith.muli %arg0, %c1_i32 : i32
    %1 = arith.addi %0, %arg1 : i32
    %c0_i32 = arith.constant 0 : i32
    %2 = arith.minsi %1, %c0_i32 : i32
    %c0_i32_0 = arith.constant 0 : i32
    %c0_i32_1 = arith.constant 0 : i32
    return %2, %c0_i32_0 : i32, i32
  }
  func.func @transform_1(%arg0: i32, %arg1: i32) -> (i32, i32) {
    %c1_i32 = arith.constant 1 : i32
    %0 = arith.muli %arg0, %c1_i32 : i32
    %1 = arith.addi %0, %arg1 : i32
    %c0_i32 = arith.constant 0 : i32
    %2 = arith.minsi %1, %c0_i32 : i32
    %c0_i32_0 = arith.constant 0 : i32
    %c0_i32_1 = arith.constant 0 : i32
    return %2, %c0_i32_0 : i32, i32
  }
  func.func @transform_2(%arg0: i32, %arg1: i32) -> (i32, i32, i32) {
    %c0_i32 = arith.constant 0 : i32
    %c0_i32_0 = arith.constant 0 : i32
    %c0_i32_1 = arith.constant 0 : i32
    return %arg0, %c0_i32, %c0_i32_0 : i32, i32, i32
  }
}

</mosaic_0001>

<bundles_post_ra>
// kernel: tpu_custom_call.1
= control target key start
LH: loop header
LB: loop body
LE: loop exit
PB: predicated region body
PF: predicated region fallthrough
CT: control target
= control target key end

     0   :  { %7 = vsyncpa [#allocation3], 0  ;;  %s915_s0 = inlined_call_operand.hbm [shape: f32[16,128], index: 0, kind: input, shape index: {}]   ;;  %s916_s1 = inlined_call_operand.hbm [shape: f32[16,128], index: 1, kind: input, shape index: {}]   ;;  %s917_s2 = inlined_call_operand.hbm [shape: f32[2,8,128], index: 2, kind: output, shape index: {}]  }
   0x1   :  { %9 = vsyncpa [#allocation3 + $0x1], 0 }
   0x2   :  { %10 = vsyncpa [#allocation6], 0 }
   0x3   :  { %12 = vsyncpa [#allocation6 + $0x1], 0 }
   0x4   :  { %13 = vsyncpa [#allocation4], 0 }
   0x5   :  { %15 = vsyncpa [#allocation4 + $0x1], 0  ;;  %s703_s9 = smov 0   ;;  %s705_s10 = smov 0  }
   0x6   :  { %s707_s11 = smov 0   ;;  %s709_s12 = smov 0  }
   0x7   :  { %s711_s13 = smov 0   ;;  %s713_s14 = smov 0  }
   0x8   :  { %s715_s15 = smov 0   ;;  %s717_s16 = smov 0  }
   0x9 LB: > { %s396_s17 = sadd.s32 4294967295, %s680_s16   ;;  %s397_s18 = sadd.s32 4294967294, %s680_s16   ;;  %s680_s16 = sphi %s717_s16, %s21_s16   ;;  %s676_s15 = sphi %s715_s15, %s936_s15   ;;  %s672_s14 = sphi %s713_s14, %s935_s14   ;;  %s668_s13 = sphi %s711_s13, %s905_s13   ;;  %s664_s12 = sphi %s709_s12, %s934_s12   ;;  %s660_s11 = sphi %s707_s11, %s933_s11   ;;  %s656_s10 = sphi %s705_s10, %s932_s10   ;;  %s652_s9 = sphi %s703_s9, %s931_s9  }
   0xa   : > { %s33_s19 = sadd.s32 1, %s676_s15  ;;  %p649_p1 = scmp.ne.s32.totalorder %s668_s13, 0 }
   0xb   : > { %p35_p0 = scmp.ge.s32.totalorder %s33_s19, 2  ;;  %p54_p2 = scmp.eq.s32.totalorder %s680_s16, 0 }
   0xc   : > { %p59_p3 = scmp.ne.s32.totalorder %s668_s13, %s664_s12  ;;  %p60_p5 = scmp.eq.s32.totalorder %s396_s17, 0 }
   0xd   : > { %s938_s19 = smov (%p35_p0, %s33_s19), 0  ;;  %p749_p4 = por %p649_p1, %p54_p2 }
   0xe   : > { %p753_p6 = por %p60_p5, %p59_p3  ;;  %s101_s22 = ssub.s32 %s676_s15, %s938_s19 }
   0xf   : > { %p102_p7 = scmp.eq.s32.totalorder %s101_s22, 0  ;;  %s104_s23 = sadd.s32 1, %s660_s11 }
  0x10   : > { %s921_s21 = scalar_select %p753_p6, 1, 0 }
  0x11   : > { %s761_s24 = scalar_select %p102_p7, %s660_s11, %s104_s23  }
  0x12   : > { %p114_p8 = scmp.ne.s32.totalorder %s660_s11, %s656_s10  ;;  %p115_p9 = scmp.eq.s32.totalorder %s396_s17, 1 }
  0x13   : > { %p120_p10 = scmp.ne.s32.totalorder %s656_s10, %s652_s9  ;;  %p121_p11 = scmp.eq.s32.totalorder %s397_s18, 1 }
  0x14   : > { %p767_p12 = por %p115_p9, %p114_p8  ;;  %p436_p1 = scmp.lt.s32.totalorder %s680_s16, 2 }
  0x15   : > { %p772_p0 = por %p121_p11, %p120_p10  ;;  %s682_s27 = smov [#allocation2]  }
  0x16   : > { %s922_s25 = scalar_select %p767_p12, 1, 0 }
  0x17   : > { %s923_s26 = scalar_select %p772_p0, 1, 0 }
  0x18   : > { %s155_s28 = sshll.u32 %s682_s27, 4  ;;  %p779_p2 = pnand %p436_p1, %p749_p4  ;;  %s156_s28 = int_to_ptr.vmem [resolvable:$true] %s155_s28 }
  0x19   : > { %s513_s4 = scalar_lea.hbm %s915_s0, 256 }
  0x1a   : > { %p514_p3 = scmp.ne.s32.totalorder %s915_s0, %s513_s4  ;;  %p515_p5 = pneg %p779_p2 }
  0x1b   : > { %p520_p8 = scmp.lt.u32.totalorder %s513_s4, %s513_s4  ;;  %p522_p9 = scmp.lt.u32.totalorder %s513_s4, %s915_s0 }
  0x1c   : > { %p516_p7 = pnand %p515_p5, %p514_p3 }
  0x1d   : > { %p523_p10 = por %p522_p9, %p520_p8 }
  0x1e   : > { %p517_p4 = pneg %p516_p7 }
  0x20   : > { %p524_p11 = pnand %p523_p10, %p517_p4 }
  0x22   : > { %527 = shalt.err (!%p524_p11)
}
  0x23   : > { %s528_s12 = scalar_lea.vmem %s156_s28, 256  ;;  %s535_s17 = scalar_lea.vmem %s156_s28, 512 }
  0x24   : > { %p529_p1 = scmp.ne.s32.totalorder %s156_s28, %s528_s12  ;;  %p536_p12 = scmp.lt.s32.totalorder %s156_s28, %s156_s28 }
  0x25   : > { %p537_p6 = scmp.lt.s32.totalorder %s535_s17, %s528_s12 }
  0x26   : > { %p531_p13 = pnand %p529_p1, %p515_p5 }
  0x27   : > { %p538_p3 = por %p537_p6, %p536_p12 }
  0x28   : > { %p532_p0 = pneg %p531_p13 }
  0x2a   : > { %p539_p7 = pnand %p538_p3, %p532_p0 }
  0x2c   : > { %542 = shalt.err (!%p539_p7)
}
  0x2d   : > { %s683_s18 = smov 128   ;;  %s684_s20 = smov 8  }
  0x2e   : > { %428 = dma.hbm_to_vmem [thread:$0]  (!%p779_p2), %s915_s0, 256, %s156_s28, [#allocation3], %s683_s18, %s683_s18, %s684_s20  }
  0x2f   : > { %p406_p13 = scmp.ge.s32.totalorder %s680_s16, 1  ;;  %p187_p4 = scmp.lt.s32.totalorder %s680_s16, 3 }
  0x30   : > { %s685_s30 = smov [#allocation5]   ;;  %s543_s6 = scalar_lea.hbm %s916_s1, 256 }
  0x31   : > { %p810_p8 = pnand %p406_p13, %p187_p4  ;;  %s179_s3 = sshll.u32 %s685_s30, 4  ;;  %s180_s3 = int_to_ptr.vmem [resolvable:$true] %s179_s3 }
  0x32   : > { %p544_p6 = scmp.ne.s32.totalorder %s916_s1, %s543_s6  ;;  %p550_p9 = scmp.lt.u32.totalorder %s543_s6, %s543_s6 }
  0x33   : > { %s925_s27 = scalar_select %p810_p8, 1, 0 }
  0x34   : > { %p546_p12 = pnand %p544_p6, %p515_p5  ;;  %p552_p10 = scmp.lt.u32.totalorder %s543_s6, %s916_s1 }
  0x36   : > { %p547_p0 = pneg %p546_p12  ;;  %p553_p11 = por %p552_p10, %p550_p9 }
  0x38   : > { %p554_p1 = pnand %p553_p11, %p547_p0 }
  0x3a   : > { %557 = shalt.err (!%p554_p1)
}
  0x3b   : > { %s558_s17 = scalar_lea.vmem %s180_s3, 256  ;;  %s565_s22 = scalar_lea.vmem %s180_s3, 512 }
  0x3c   : > { %p559_p3 = scmp.ne.s32.totalorder %s180_s3, %s558_s17  ;;  %p566_p4 = scmp.lt.s32.totalorder %s180_s3, %s180_s3 }
  0x3d   : > { %p567_p8 = scmp.lt.s32.totalorder %s565_s22, %s558_s17 }
  0x3e   : > { %p561_p7 = pnand %p559_p3, %p515_p5 }
  0x3f   : > { %p568_p6 = por %p567_p8, %p566_p4 }
  0x40   : > { %p562_p13 = pneg %p561_p7 }
  0x42   : > { %p569_p12 = pnand %p568_p6, %p562_p13 }
  0x44   : > { %572 = shalt.err (!%p569_p12)
}
  0x45   : > { %431 = dma.hbm_to_vmem [thread:$0]  (!%p779_p2), %s916_s1, 256, %s180_s3, [#allocation6], %s683_s18, %s683_s18, %s684_s20  }
  0x46   : > { %p926_p0 = scmp.ne.s32.totalorder %s925_s27, 0 }
  0x47   : > { %s193_s4 = sand.u32 (!%p926_p0), 1, %s668_s13   ;;  %p927_p5 = scmp.ne.s32.totalorder (!%p926_p0), %s921_s21, 0 }
  0x48   : > { %191 = sbr.rel (%p926_p0) target bundleno = 137 (0x89), region = 28  ;;  %s407_s5 = sshll.u32 (!%p926_p0), %s193_s4, 4 }
  0x49   : > { %s194_s6 = scalar_lea.sflag (!%p926_p0), [#allocation3], %s193_s4  ;;  %s197_s7 = scalar_lea.vmem (!%p926_p0), [#allocation2], %s407_s5 }
  0x4f   : > { %638 = dma.done.wait (%p927_p5), %s194_s6, 256  }
  0x50   : > { %640 = vsyncadd (%p927_p5), %s194_s6, 4294967040  ;;  %s203_s29 = scalar_lea.sflag [#allocation6], %s193_s4  ;;  %s206_s8 = scalar_lea.vmem [#allocation5], %s407_s5 }
  0x51   : > { %642 = dma.done.wait (%p927_p5), %s203_s29, 256  }
  0x52   : > { %644 = vsyncadd (%p927_p5), %s203_s29, 4294967040  ;;  %s229_s18 = sand.u32 1, %s656_s10   ;;  %v686_v0 = vmov 0.0   ;;  %v245_v1 = vld [vmem:[%s197_s7] sm:$0xff]  ;;  %v246_v2 = vld [vmem:[%s197_s7 + $0x8] sm:$0xff]  ;;  %p410_p2 = scmp.ge.s32.totalorder %s672_s14, 1 }
  0x53   : > { %s409_s20 = sshll.u32 %s229_s18, 3  ;;  %v247_v3 = vld [vmem:[%s206_s8] sm:$0xff]  ;;  %v248_v4 = vld [vmem:[%s206_s8 + $0x8] sm:$0xff] }
  0x54   : > { %s851_s27 = scalar_lea.vmem [#allocation7], %s409_s20  ;;  %v249_v5 = vsub.f32 %v245_v1, %v247_v3  ;;  %v250_v6 = vsub.f32 %v246_v2, %v248_v4  ;;  %257 = sbr.rel (%p410_p2) target bundleno = 96 (0x60), region = 44 }
  0x55   : > { %244 = vst [vmem:[%s851_s27] sm:$0xff] %v686_v0 }
  0x56   : > { %v251_v7 = vmul.f32 %v249_v5, %v249_v5  ;;  %v252_v8 = vmul.f32 %v250_v6, %v250_v6 }
  0x58   : > { %v258_v9 = vadd.f32 (!%p410_p2), %v252_v8, %v251_v7 }
  0x5c   : > { %v259_v10 = vld [vmem:[%s851_s27] sm:$0xff] }
  0x5d   : > { %v260_v11 = vadd.f32 %v259_v10, %v258_v9 }
  0x5f   : > { %261 = vst [vmem:[%s851_s27] sm:$0xff] %v260_v11 }
  0x60 PF: > { %p411_p8 = scmp.lt.s32.totalorder %s672_s14, 1 }
  0x61   : > { %s412_s21 = sshll.u32 (!%p411_p8), %s672_s14, 4  ;;  %v267_v12 = vlaneseq (!%p411_p8) }
  0x62   : > { %265 = sbr.rel (%p411_p8) target bundleno = 112 (0x70), region = 48  ;;  %v270_v13 = vstv (!%p411_p8), %s412_s21 }
  0x63   : > { %v268_v14 = vshrl.u32 (!%p411_p8), %v267_v12, 7 }
  0x65   : > { %v269_v15 = vadd.s32 (!%p411_p8), 8, %v268_v14  ;;  %v271_v16 = vadd.s32 (!%p411_p8), %v270_v13, %v268_v14 }
  0x66   : > { %v278_v20 = vld [vmem:[%s851_s27] sm:$0xff] (!%p411_p8) }
  0x67   : > { %v272_v17 = vadd.s32 (!%p411_p8), %v270_v13, %v269_v15  ;;  %vm273_vm0 = vcmp.lt.s32.totalorder (!%p411_p8), %v271_v16, 16 }
  0x68   : > { %v275_v18 = vsel (!%p411_p8), %vm273_vm0, %v251_v7, 0.0 }
  0x69   : > { %vm274_vm1 = vcmp.lt.s32.totalorder %v272_v17, 16 }
  0x6a   : > { %v276_v19 = vsel %vm274_vm1, %v252_v8, 0.0 }
  0x6b   : > { %v277_v21 = vadd.f32 %v276_v19, %v275_v18 }
  0x6d   : > { %v279_v22 = vadd.f32 %v278_v20, %v277_v21 }
  0x6f   : > { %280 = vst [vmem:[%s851_s27] sm:$0xff] %v279_v22 }
  0x70 PF: > { %s414_s3 = sshll.u32 %s672_s14, 7  ;;  %s295_s22 = sshll.u32 %s851_s27, 4  ;;  %s296_s22 = int_to_ptr.vmem [resolvable:$true] %s295_s22 }
  0x71   : > { %s865_s17 = scalar_lea.hbm %s917_s2, %s414_s3  ;;  %s282_s23 = scalar_lea.sflag [#allocation4], %s229_s18 }
  0x72   : > { %s573_s30 = scalar_lea.vmem %s296_s22, 128  ;;  %p928_p10 = scmp.ne.s32.totalorder %s922_s25, 0 }
  0x73   : > { %p574_p9 = scmp.ne.s32.totalorder %s296_s22, %s573_s30  ;;  %s687_s4 = smov [#allocation7]  }
  0x74   : > { %s577_s5 = sshll.u32 %s687_s4, 4  ;;  %s578_s5 = int_to_ptr.vmem [resolvable:$false] %s577_s5 }
  0x75   : > { %p575_p11 = pnand %p574_p9, %p928_p10  ;;  %s579_s6 = scalar_lea.vmem %s578_s5, 256 }
  0x76   : > { %p580_p3 = scmp.lt.s32.totalorder %s296_s22, %s578_s5  ;;  %p581_p7 = scmp.lt.s32.totalorder %s579_s6, %s573_s30 }
  0x77   : > { %p576_p1 = pneg %p575_p11 }
  0x78   : > { %p582_p13 = por %p581_p7, %p580_p3 }
  0x7a   : > { %p583_p4 = pnand %p582_p13, %p576_p1 }
  0x7c   : > { %586 = shalt.err (!%p583_p4)
}
  0x7d   : > { %s587_s14 = scalar_lea.hbm %s865_s17, 128  ;;  %s591_s8 = scalar_lea.hbm %s917_s2, 256 }
  0x7e   : > { %p588_p6 = scmp.ne.s32.totalorder %s865_s17, %s587_s14  ;;  %p592_p5 = scmp.lt.u32.totalorder %s865_s17, %s917_s2 }
  0x7f   : > { %p593_p2 = scmp.lt.u32.totalorder %s591_s8, %s587_s14  ;;  %p595_p9 = scmp.lt.u32.totalorder %s587_s14, %s865_s17 }
  0x80   : > { %p589_p12 = pnand %p588_p6, %p928_p10 }
  0x81   : > { %p594_p8 = por %p593_p2, %p592_p5 }
  0x82   : > { %p590_p0 = pneg %p589_p12 }
  0x83   : > { %p596_p11 = por %p595_p9, %p594_p8 }
  0x85   : > { %p597_p1 = pnand %p596_p11, %p590_p0 }
  0x87   : > { %600 = shalt.err (!%p597_p1)
}
  0x88   : > { %423 = dma.vmem_to_hbm [thread:$0]  (%p928_p10), %s296_s22, 128, %s865_s17, %s282_s23  }
  0x89 PF: > { %s307_s27 = sand.u32 1, %s652_s9   ;;  %p929_p3 = scmp.ne.s32.totalorder %s923_s26, 0 }
  0x8a   : > { %p930_p7 = scmp.ge.s32.totalorder %s680_s16, 2  ;;  %s308_s21 = scalar_lea.sflag [#allocation4], %s307_s27 }
  0x8c   : > { %p433_p13 = pnand %p930_p7, %p929_p3 }
  0x8e   : > { %646 = dma.done.wait (!%p433_p13), %s308_s21, 128  }
  0x8f   : > { %648 = vsyncadd (!%p433_p13), %s308_s21, 4294967168  ;;  %s21_s16 = sadd.s32 1, %s680_s16   ;;  %s931_s9 = smov %s656_s10 }
  0x90   : > { %p18_p4 = scmp.ge.s32.totalorder %s21_s16, 4   ;;  %s932_s10 = smov %s660_s11 }
  0x91   : > { %s933_s11 = smov %s761_s24  ;;  %s934_s12 = smov %s668_s13 }
  0x92   : > { %s905_s13 = smov 0   ;;  %s935_s14 = smov %s676_s15 }
  0x93   : > { %s936_s15 = smov %s938_s19  ;;  %20 = sbr.rel (!%p18_p4) target bundleno = 9 (0x9), region = 98 }
  0x9a   :  { %313 = vsyncpa [#allocation3], 1 }
  0x9b   :  { %315 = vsyncpa [#allocation3 + $0x1], 1 }
  0x9c   :  { %316 = vsyncpa [#allocation6], 1 }
  0x9d   :  { %318 = vsyncpa [#allocation6 + $0x1], 1 }
  0x9e   :  { %319 = vsyncpa [#allocation4], 1 }
  0x9f   :  { %321 = vsyncpa [#allocation4 + $0x1], 1 }

</bundles_post_ra>
